<compile_context>
chip_gen: v5e
topology: v5e:2x2
jax: 0.10.0
libtpu: 0.0.40
codegen_flags: <defaults>
</compile_context>

<pallas_src>
import jax
import jax.numpy as jnp
from jax import lax
from jax.experimental import pallas as pl
from jax.experimental.pallas import tpu as pltpu


# ------------------------------ Pallas kernel ------------------------------ #
def _upblock_kernel(x_ref, ah_ref, kwc_ref, b_ref, out_ref):
    # x_ref:   (1, H, W*Cin)     one image; W and Cin flattened on the lane axis
    # ah_ref:  (2H, H)           H-axis bilinear interpolation matrix
    # kwc_ref: (W*Cin, 2W*Cout)  fused (W-axis interpolation x 1x1 conv) weight
    # b_ref:   (1, 2W*Cout)      conv bias tiled across the 2W output positions
    # out_ref: (1, 2H, 2W*Cout)
    t = jnp.dot(x_ref[0], kwc_ref[...], preferred_element_type=jnp.float32)
    out = jnp.dot(ah_ref[...], t, preferred_element_type=jnp.float32) + b_ref[...]
    out_ref[0] = out


# ------------------------------ host wrapper ------------------------------- #
def _interp_matrix(in_size, out_size):
    """1-D bilinear interpolation matrix (out_size, in_size), align_corners=True."""
    if in_size == 1:
        return jnp.ones((out_size, 1), jnp.float32)
    pos = jnp.arange(out_size, dtype=jnp.float32) * (in_size - 1) / (out_size - 1)
    lo = jnp.clip(jnp.floor(pos), 0, in_size - 2).astype(jnp.int32)
    frac = pos - lo.astype(jnp.float32)
    rows = jnp.arange(out_size)
    a = jnp.zeros((out_size, in_size), jnp.float32)
    a = a.at[rows, lo].add(1.0 - frac)
    a = a.at[rows, lo + 1].add(frac)
    return a


def upblock_pallas(x_nchw, w_oihw, bias):
    """x_nchw: (N, Cin, H, W) f32.  Returns (N, Cin//2, 2H, 2W) f32."""
    N, Cin, H, W = x_nchw.shape
    Cout = w_oihw.shape[0]
    OH, OW = 2 * H, 2 * W

    # ---- host-side (trace-time) prep: layout glue + weight folding ---------
    # NCHW -> NHWC -> (N, H, W*Cin).  (If the caller can hand over NHWC these
    # transposes disappear; kept because the PyTorch spec is NCHW.)
    x2d = jnp.transpose(x_nchw, (0, 2, 3, 1)).reshape(N, H, W * Cin)

    ah = _interp_matrix(H, OH)                         # (2H, H)
    aw = _interp_matrix(W, OW)                         # (2W, W)
    wc = jnp.transpose(w_oihw[:, :, 0, 0], (1, 0))     # (Cin, Cout)
    # Kwc[w*Cin + c, v*Cout + o] = Aw[v, w] * Wc[c, o]
    kwc = jnp.einsum('vw,co->wcvo', aw, wc).reshape(W * Cin, OW * Cout)
    b_row = jnp.tile(bias, OW).reshape(1, OW * Cout)

    def full(shape):
        return pl.BlockSpec(shape, lambda n: (0,) * len(shape))

    out2d = pl.pallas_call(
        _upblock_kernel,
        out_shape=jax.ShapeDtypeStruct((N, OH, OW * Cout), jnp.float32),
        grid_spec=pltpu.PrefetchScalarGridSpec(
            num_scalar_prefetch=0,
            grid=(N,),
            in_specs=[
                pl.BlockSpec((1, H, W * Cin), lambda n: (n, 0, 0)),
                full((OH, H)),                 # Ah
                full((W * Cin, OW * Cout)),    # fused W-interp x conv weight
                full((1, OW * Cout)),          # bias row
            ],
            out_specs=pl.BlockSpec((1, OH, OW * Cout), lambda n: (n, 0, 0)),
        ),
        compiler_params=pltpu.CompilerParams(
            dimension_semantics=("parallel",)),
    )(x2d, ah, kwc, b_row)

    # (N, 2H, 2W*Cout) -> (N, 2H, 2W, Cout) -> NCHW (pure layout glue)
    return jnp.transpose(out2d.reshape(N, OH, OW, Cout), (0, 3, 1, 2))


# --------------------------- pure-JAX reference ----------------------------- #
def _ref_upblock(x_nchw, w_oihw, bias):
    N, C, H, W = x_nchw.shape
    OH, OW = 2 * H, 2 * W

    def lerp(a, in_s, out_s, axis):
        pos = jnp.arange(out_s, dtype=jnp.float32) * (in_s - 1) / (out_s - 1)
        lo = jnp.clip(jnp.floor(pos), 0, in_s - 2).astype(jnp.int32)
        frac = pos - lo.astype(jnp.float32)
        a_lo = jnp.take(a, lo, axis=axis)
        a_hi = jnp.take(a, lo + 1, axis=axis)
        shape = [1] * a.ndim
        shape[axis] = out_s
        return a_lo * (1.0 - frac.reshape(shape)) + a_hi * frac.reshape(shape)

    up = lerp(x_nchw, H, OH, axis=2)          # bilinear, align_corners=True
    up = lerp(up, W, OW, axis=3)
    out = lax.conv_general_dilated(
        up, w_oihw, window_strides=(1, 1), padding='VALID',
        dimension_numbers=('NCHW', 'OIHW', 'NCHW'))
    return out + bias[None, :, None, None]


# --------------------------------- main ------------------------------------ #
if __name__ == "__main__":
    # UpBlock(in_channels=64): conv maps 64 -> 32 channels after 2x upsample.
    N, Cin, H, W = 2, 64, 8, 8
    Cout = Cin // 2

    key = jax.random.PRNGKey(0)
    kx, kw, kb = jax.random.split(key, 3)
    x = jax.random.normal(kx, (N, Cin, H, W), jnp.float32)
    w_oihw = jax.random.normal(kw, (Cout, Cin, 1, 1), jnp.float32) * 0.05
    bias = 0.1 * jax.random.normal(kb, (Cout,), jnp.float32)

    run = jax.jit(upblock_pallas)
    out = jax.block_until_ready(run(x, w_oihw, bias))

    ref = _ref_upblock(x, w_oihw, bias)
    assert out.shape == (N, Cout, 2 * H, 2 * W), out.shape
    err = float(jnp.max(jnp.abs(out - ref)))
    assert jnp.allclose(out, ref, atol=1e-4, rtol=1e-4), err

    print("KERNEL_OK")
</pallas_src>

<mosaic_0001>
module attributes {stable_mosaic.version = 11 : i64} {
  func.func @_upblock_kernel(%arg0: i32, %arg1: memref<1x8x512xf32, #tpu.memory_space<vmem>>, %arg2: memref<16x8xf32, #tpu.memory_space<vmem>>, %arg3: memref<512x512xf32, #tpu.memory_space<vmem>>, %arg4: memref<1x512xf32, #tpu.memory_space<vmem>>, %arg5: memref<1x16x512xf32, #tpu.memory_space<vmem>>) attributes {dimension_semantics = [#tpu.dimension_semantics<parallel>], iteration_bounds = array<i64: 2>, scalar_prefetch = 0 : i64, scratch_operands = 0 : i64, tpu.core_type = #tpu.core_type<tc>, window_params = [{transform_indices = @transform_0, window_bounds = array<i64: 1, 8, 512>}, {pipeline_mode = #tpu.pipeline_mode<synchronous>, transform_indices = @transform_1, window_bounds = array<i64: 16, 8>}, {pipeline_mode = #tpu.pipeline_mode<synchronous>, transform_indices = @transform_2, window_bounds = array<i64: 512, 512>}, {pipeline_mode = #tpu.pipeline_mode<synchronous>, transform_indices = @transform_3, window_bounds = array<i64: 1, 512>}, {transform_indices = @transform_4, window_bounds = array<i64: 1, 16, 512>}]} {
    %c0 = arith.constant 0 : index
    %c0_0 = arith.constant 0 : index
    %c0_1 = arith.constant 0 : index
    %0 = vector.load %arg1[%c0, %c0_0, %c0_1] : memref<1x8x512xf32, #tpu.memory_space<vmem>>, vector<1x8x512xf32>
    %1 = vector.shape_cast %0 : vector<1x8x512xf32> to vector<8x512xf32>
    %c0_2 = arith.constant 0 : index
    %c0_3 = arith.constant 0 : index
    %2 = vector.load %arg3[%c0_2, %c0_3] : memref<512x512xf32, #tpu.memory_space<vmem>>, vector<512x512xf32>
    %cst = arith.constant dense<0.000000e+00> : vector<8x512xf32>
    %3 = tpu.matmul %1, %2, %cst {dimension_numbers = #tpu.dot_dimension_numbers<[1], [0], [0], [1], [0, 0, 1, 1], [], []>} : vector<8x512xf32>, vector<512x512xf32>, vector<8x512xf32> -> vector<8x512xf32>
    %c0_4 = arith.constant 0 : index
    %c0_5 = arith.constant 0 : index
    %4 = vector.load %arg2[%c0_4, %c0_5] : memref<16x8xf32, #tpu.memory_space<vmem>>, vector<16x8xf32>
    %cst_6 = arith.constant dense<0.000000e+00> : vector<16x512xf32>
    %5 = tpu.matmul %4, %3, %cst_6 {dimension_numbers = #tpu.dot_dimension_numbers<[1], [0], [0], [1], [0, 0, 1, 1], [], []>} : vector<16x8xf32>, vector<8x512xf32>, vector<16x512xf32> -> vector<16x512xf32>
    %c0_7 = arith.constant 0 : index
    %c0_8 = arith.constant 0 : index
    %6 = vector.load %arg4[%c0_7, %c0_8] : memref<1x512xf32, #tpu.memory_space<vmem>>, vector<1x512xf32>
    %7 = vector.broadcast %6 : vector<1x512xf32> to vector<16x512xf32>
    %8 = arith.addf %5, %7 : vector<16x512xf32>
    %c0_9 = arith.constant 0 : index
    %c0_10 = arith.constant 0 : index
    %c0_11 = arith.constant 0 : index
    %9 = vector.load %arg5[%c0_9, %c0_10, %c0_11] : memref<1x16x512xf32, #tpu.memory_space<vmem>>, vector<1x16x512xf32>
    %10 = vector.shape_cast %9 : vector<1x16x512xf32> to vector<16x512xf32>
    %11 = vector.shape_cast %8 : vector<16x512xf32> to vector<1x16x512xf32>
    tpu.vector_store %arg5[%c0_9, %c0_10, %c0_11], %11 {strides = array<i32>} : memref<1x16x512xf32, #tpu.memory_space<vmem>>, vector<1x16x512xf32>,
    return
  }
  func.func @transform_0(%arg0: i32) -> (i32, i32, i32) {
    %c0_i32 = arith.constant 0 : i32
    %c0_i32_0 = arith.constant 0 : i32
    %c0_i32_1 = arith.constant 0 : i32
    return %arg0, %c0_i32, %c0_i32_0 : i32, i32, i32
  }
  func.func @transform_1(%arg0: i32) -> (i32, i32) {
    %c0_i32 = arith.constant 0 : i32
    %c0_i32_0 = arith.constant 0 : i32
    %c0_i32_1 = arith.constant 0 : i32
    return %c0_i32, %c0_i32_0 : i32, i32
  }
  func.func @transform_2(%arg0: i32) -> (i32, i32) {
    %c0_i32 = arith.constant 0 : i32
    %c0_i32_0 = arith.constant 0 : i32
    %c0_i32_1 = arith.constant 0 : i32
    return %c0_i32, %c0_i32_0 : i32, i32
  }
  func.func @transform_3(%arg0: i32) -> (i32, i32) {
    %c0_i32 = arith.constant 0 : i32
    %c0_i32_0 = arith.constant 0 : i32
    %c0_i32_1 = arith.constant 0 : i32
    return %c0_i32, %c0_i32_0 : i32, i32
  }
  func.func @transform_4(%arg0: i32) -> (i32, i32, i32) {
    %c0_i32 = arith.constant 0 : i32
    %c0_i32_0 = arith.constant 0 : i32
    %c0_i32_1 = arith.constant 0 : i32
    return %arg0, %c0_i32, %c0_i32_0 : i32, i32, i32
  }
}

</mosaic_0001>

<bundles_post_ra>
// kernel: tile.8
= control target key start
LH: loop header
LB: loop body
LE: loop exit
PB: predicated region body
PF: predicated region fallthrough
CT: control target
= control target key end

     0   :  { %s28_s0 = inlined_call_operand.vmem [shape: f32[32], index: 0, kind: input, shape index: {}]   ;;  %s29_s1 = inlined_call_operand.vmem [shape: f32[16,32], index: 1, kind: output, shape index: {}]  }
   0x1   :  { %v4_v0 = vld [vmem:[%s28_s0] ss:$0 sm:$0xff] }
   0x2   :  { %5 = vst [vmem:[%s29_s1] sm:$0xff] %v4_v0 }
   0x3   :  { %8 = vst [vmem:[%s29_s1 + $0x8] sm:$0xff] %v4_v0 }

// kernel: tile.9
= control target key start
LH: loop header
LB: loop body
LE: loop exit
PB: predicated region body
PF: predicated region fallthrough
CT: control target
= control target key end

     0   :  { %s56_s8 = smov 96   ;;  %s57_s11 = smov 32   ;;  %vm3_vm0 = vcmask 261120   ;;  %vm9_vm1 = vcmask 1048320   ;;  %vm15_vm2 = vcmask 785920   ;;  %vm21_vm3 = vcmask 523520   ;;  %s93_s0 = inlined_call_operand.vmem [shape: f32[16,32], index: 0, kind: input, shape index: {}]   ;;  %s94_s1 = inlined_call_operand.vmem [shape: f32[1,512], index: 1, kind: output, shape index: {}]  }
   0x1   :  { %v47_v0 = vld [vmem:[%s93_s0 + $0x3] ss:$4 sm:$0xf]   ;;  %v49_v1 = vld [vmem:[%s93_s0 + $0x1] ss:$4 sm:$0xf]  }
   0x2   :  { %7 = vrot.lane.b32.xlu0 %v47_v0, %s56_s8  ;;  %19 = vrot.lane.b32.xlu1 %v49_v1, %s57_s11  ;;  %v48_v2 = vld [vmem:[%s93_s0 + $0x2] ss:$4 sm:$0xf]   ;;  %s58_s14 = smov 64  }
   0x3   :  { %v2_v3 = vld [vmem:[%s93_s0] ss:$4 sm:$0xf]  }
   0x4   :  { %4 = vst.msk [vmem:[#allocation0] ss:$8 sm:$0xf] %vm3_vm0, %v2_v3  }
   0xa   :  { %13 = vrot.lane.b32.xlu0 %v48_v2, %s58_s14 }
  0x74   :  { %v8_v4 = vpop.permute.xlu0 %7   ;;  %v20_v5 = vpop.permute.xlu1 %19  }
  0x75   :  { %10 = vst.msk [vmem:[#allocation0] ss:$8 sm:$0xf] %vm9_vm1, %v8_v4  }
  0x7c   :  { %v14_v6 = vpop.permute.xlu0 %13  }
  0x7d   :  { %16 = vst.msk [vmem:[#allocation0] ss:$8 sm:$0xf] %vm15_vm2, %v14_v6  }
  0x7e   :  { %22 = vst.msk [vmem:[#allocation0] ss:$8 sm:$0xf] %vm21_vm3, %v20_v5  }
  0x85   :  { %v25_v7 = vld [vmem:[#allocation0] sm:$0x1]  ;;  %v30_v8 = vld [vmem:[#allocation0 + $0x8] sm:$0x1]  ;;  %v36_v9 = vld [vmem:[#allocation0 + $0x10] sm:$0x1] }
  0x86   :  { %28 = vst [vmem:[%s94_s1] sm:$0x1] %v25_v7  ;;  %v42_v10 = vld [vmem:[#allocation0 + $0x18] sm:$0x1] }
  0x87   :  { %50 = vst [vmem:[%s94_s1 + $0x1] sm:$0x1] %v30_v8 }
  0x88   :  { %51 = vst [vmem:[%s94_s1 + $0x2] sm:$0x1] %v36_v9 }
  0x89   :  { %52 = vst [vmem:[%s94_s1 + $0x3] sm:$0x1] %v42_v10 }

// kernel: upblock_pallas.1
= control target key start
LH: loop header
LB: loop body
LE: loop exit
PB: predicated region body
PF: predicated region fallthrough
CT: control target
= control target key end

     0   :  { %s1014_s15 = smov 0   ;;  %s1860_s0 = inlined_call_operand.vmem [shape: f32[2,8,512], index: 0, kind: input, shape index: {}]   ;;  %s1861_s1 = inlined_call_operand.vmem [shape: f32[16,8], index: 1, kind: input, shape index: {}]   ;;  %s1862_s2 = inlined_call_operand.vmem [shape: f32[512,512], index: 2, kind: input, shape index: {}]   ;;  %s1863_s3 = inlined_call_operand.vmem [shape: f32[1,512], index: 3, kind: input, shape index: {}]   ;;  %s1864_s4 = inlined_call_operand.vmem [shape: f32[2,16,512], index: 4, kind: output, shape index: {}]  }
   0x1 LB: > { %s952_s16 = sadd.s32 4294967295, %s987_s15   ;;  %p956_p0 = scmp.ge.s32.totalorder %s987_s15, 1  ;;  %s987_s15 = sphi %s1014_s15, %s14_s15  }
   0x2   : > { %p162_p1 = scmp.lt.s32.totalorder %s987_s15, 3 }
   0x4   : > { %p163_p2 = pnand %p956_p0, %p162_p1 }
   0x5   : > { %p1318_p3 = scmp.lt.s32.totalorder (!%p163_p2), %s952_s16, 1 }
   0x6   : > { %166 = sbr.rel (%p163_p2) target bundleno = 454 (0x1c6), region = 36 }
   0xb   : > { %v390_v0 = vld [vmem:[%s1862_s2 + $0x5e0] sm:$0xff]  ;;  %v391_v62 = vld [vmem:[%s1862_s2 + $0x5e8] sm:$0xff]  ;;  %s1867_s16 = smov (!%p1318_p3, %s952_s16), 1  ;;  %vm790_vm0 = vcmask 64512  }
   0xc   : > { %v386_v1 = vld [vmem:[%s1862_s2 + $0x5c0] sm:$0xff]  ;;  %498 = vmatpush.msra.mxu2 %v390_v0  ;;  %v455_v63 = vld [vmem:[%s1862_s2 + $0x7e8] sm:$0xff]  ;;  %s971_s30 = sshll.u32 %s1867_s16, 5  ;;  %s972_s10 = sshll.u32 %s1867_s16, 6 }
   0xd   : > { %v454_v2 = vld [vmem:[%s1862_s2 + $0x7e0] sm:$0xff]  ;;  %s1398_s21 = scalar_lea.vmem %s1860_s0, %s971_s30  ;;  %s197_s13 = scalar_lea.vmem %s1864_s4, %s972_s10 }
   0xe   : > { %518 = vmatpush.msra.mxu3 %v454_v2  ;;  %v262_v3 = vld [vmem:[%s1862_s2 + $0x1e0] sm:$0xff]  ;;  %499 = vmatpush.msra.mxu2 %v386_v1  ;;  %v387_v2 = vld [vmem:[%s1862_s2 + $0x5c8] sm:$0xff] }
   0xf   : > { %v326_v4 = vld [vmem:[%s1862_s2 + $0x3e0] sm:$0xff]  ;;  %458 = vmatpush.msra.mxu0 %v262_v3  ;;  %v263_v3 = vld [vmem:[%s1862_s2 + $0x1e8] sm:$0xff] }
  0x10   : > { %v382_v5 = vld [vmem:[%s1862_s2 + $0x5a0] sm:$0xff]  ;;  %478 = vmatpush.msra.mxu1 %v326_v4  ;;  %v327_v4 = vld [vmem:[%s1862_s2 + $0x3e8] sm:$0xff] }
  0x11   : > { %v450_v6 = vld [vmem:[%s1862_s2 + $0x7c0] sm:$0xff]  ;;  %500 = vmatpush.msra.mxu2 %v382_v5  ;;  %v451_v5 = vld [vmem:[%s1862_s2 + $0x7c8] sm:$0xff] }
  0x12   : > { %v258_v7 = vld [vmem:[%s1862_s2 + $0x1c0] sm:$0xff]  ;;  %519 = vmatpush.msra.mxu3 %v450_v6  ;;  %v383_v6 = vld [vmem:[%s1862_s2 + $0x5a8] sm:$0xff] }
  0x13   : > { %v322_v8 = vld [vmem:[%s1862_s2 + $0x3c0] sm:$0xff]  ;;  %459 = vmatpush.msra.mxu0 %v258_v7  ;;  %v259_v7 = vld [vmem:[%s1862_s2 + $0x1c8] sm:$0xff] }
  0x14   : > { %v446_v9 = vld [vmem:[%s1862_s2 + $0x7a0] sm:$0xff]  ;;  %479 = vmatpush.msra.mxu1 %v322_v8  ;;  %v323_v8 = vld [vmem:[%s1862_s2 + $0x3c8] sm:$0xff] }
  0x15   : > { %v254_v10 = vld [vmem:[%s1862_s2 + $0x1a0] sm:$0xff]  ;;  %520 = vmatpush.msra.mxu3 %v446_v9  ;;  %v447_v9 = vld [vmem:[%s1862_s2 + $0x7a8] sm:$0xff] }
  0x16   : > { %v378_v11 = vld [vmem:[%s1862_s2 + $0x580] sm:$0xff]  ;;  %460 = vmatpush.msra.mxu0 %v254_v10  ;;  %v379_v10 = vld [vmem:[%s1862_s2 + $0x588] sm:$0xff] }
  0x17   : > { %v318_v12 = vld [vmem:[%s1862_s2 + $0x3a0] sm:$0xff]  ;;  %501 = vmatpush.msra.mxu2 %v378_v11  ;;  %v255_v11 = vld [vmem:[%s1862_s2 + $0x1a8] sm:$0xff] }
  0x18   : > { %v442_v13 = vld [vmem:[%s1862_s2 + $0x780] sm:$0xff]  ;;  %480 = vmatpush.msra.mxu1 %v318_v12  ;;  %v319_v12 = vld [vmem:[%s1862_s2 + $0x3a8] sm:$0xff] }
  0x19   : > { %v250_v14 = vld [vmem:[%s1862_s2 + $0x180] sm:$0xff]  ;;  %521 = vmatpush.msra.mxu3 %v442_v13  ;;  %v443_v13 = vld [vmem:[%s1862_s2 + $0x788] sm:$0xff] }
  0x1a   : > { %v314_v15 = vld [vmem:[%s1862_s2 + $0x380] sm:$0xff]  ;;  %461 = vmatpush.msra.mxu0 %v250_v14  ;;  %v375_v14 = vld [vmem:[%s1862_s2 + $0x568] sm:$0xff] }
  0x1b   : > { %v374_v16 = vld [vmem:[%s1862_s2 + $0x560] sm:$0xff]  ;;  %481 = vmatpush.msra.mxu1 %v314_v15  ;;  %v251_v15 = vld [vmem:[%s1862_s2 + $0x188] sm:$0xff] }
  0x1c   : > { %v438_v17 = vld [vmem:[%s1862_s2 + $0x760] sm:$0xff]  ;;  %502 = vmatpush.msra.mxu2 %v374_v16  ;;  %v315_v16 = vld [vmem:[%s1862_s2 + $0x388] sm:$0xff] }
  0x1d   : > { %v246_v18 = vld [vmem:[%s1862_s2 + $0x160] sm:$0xff]  ;;  %522 = vmatpush.msra.mxu3 %v438_v17  ;;  %v439_v17 = vld [vmem:[%s1862_s2 + $0x768] sm:$0xff] }
  0x1e   : > { %v310_v19 = vld [vmem:[%s1862_s2 + $0x360] sm:$0xff]  ;;  %462 = vmatpush.msra.mxu0 %v246_v18  ;;  %v371_v18 = vld [vmem:[%s1862_s2 + $0x548] sm:$0xff] }
  0x1f   : > { %v370_v20 = vld [vmem:[%s1862_s2 + $0x540] sm:$0xff]  ;;  %482 = vmatpush.msra.mxu1 %v310_v19  ;;  %v247_v19 = vld [vmem:[%s1862_s2 + $0x168] sm:$0xff] }
  0x20   : > { %v434_v21 = vld [vmem:[%s1862_s2 + $0x740] sm:$0xff]  ;;  %503 = vmatpush.msra.mxu2 %v370_v20  ;;  %v311_v20 = vld [vmem:[%s1862_s2 + $0x368] sm:$0xff] }
  0x21   : > { %v242_v22 = vld [vmem:[%s1862_s2 + $0x140] sm:$0xff]  ;;  %523 = vmatpush.msra.mxu3 %v434_v21  ;;  %v435_v21 = vld [vmem:[%s1862_s2 + $0x748] sm:$0xff] }
  0x22   : > { %v306_v23 = vld [vmem:[%s1862_s2 + $0x340] sm:$0xff]  ;;  %463 = vmatpush.msra.mxu0 %v242_v22  ;;  %v367_v22 = vld [vmem:[%s1862_s2 + $0x528] sm:$0xff] }
  0x23   : > { %v366_v24 = vld [vmem:[%s1862_s2 + $0x520] sm:$0xff]  ;;  %483 = vmatpush.msra.mxu1 %v306_v23  ;;  %v243_v23 = vld [vmem:[%s1862_s2 + $0x148] sm:$0xff] }
  0x24   : > { %v430_v25 = vld [vmem:[%s1862_s2 + $0x720] sm:$0xff]  ;;  %504 = vmatpush.msra.mxu2 %v366_v24  ;;  %v307_v24 = vld [vmem:[%s1862_s2 + $0x348] sm:$0xff] }
  0x25   : > { %v238_v26 = vld [vmem:[%s1862_s2 + $0x120] sm:$0xff]  ;;  %524 = vmatpush.msra.mxu3 %v430_v25  ;;  %v431_v25 = vld [vmem:[%s1862_s2 + $0x728] sm:$0xff] }
  0x26   : > { %v302_v27 = vld [vmem:[%s1862_s2 + $0x320] sm:$0xff]  ;;  %464 = vmatpush.msra.mxu0 %v238_v26  ;;  %v363_v26 = vld [vmem:[%s1862_s2 + $0x508] sm:$0xff] }
  0x27   : > { %v362_v28 = vld [vmem:[%s1862_s2 + $0x500] sm:$0xff]  ;;  %484 = vmatpush.msra.mxu1 %v302_v27  ;;  %v239_v27 = vld [vmem:[%s1862_s2 + $0x128] sm:$0xff] }
  0x28   : > { %v426_v29 = vld [vmem:[%s1862_s2 + $0x700] sm:$0xff]  ;;  %505 = vmatpush.msra.mxu2 %v362_v28  ;;  %v303_v28 = vld [vmem:[%s1862_s2 + $0x328] sm:$0xff] }
  0x29   : > { %v234_v30 = vld [vmem:[%s1862_s2 + $0x100] sm:$0xff]  ;;  %525 = vmatpush.msra.mxu3 %v426_v29  ;;  %v427_v29 = vld [vmem:[%s1862_s2 + $0x708] sm:$0xff] }
  0x2a   : > { %v298_v31 = vld [vmem:[%s1862_s2 + $0x300] sm:$0xff]  ;;  %465 = vmatpush.msra.mxu0 %v234_v30  ;;  %v359_v30 = vld [vmem:[%s1862_s2 + $0x4e8] sm:$0xff] }
  0x2b   : > { %v358_v32 = vld [vmem:[%s1862_s2 + $0x4e0] sm:$0xff]  ;;  %485 = vmatpush.msra.mxu1 %v298_v31  ;;  %v235_v31 = vld [vmem:[%s1862_s2 + $0x108] sm:$0xff] }
  0x2c   : > { %v422_v33 = vld [vmem:[%s1862_s2 + $0x6e0] sm:$0xff]  ;;  %506 = vmatpush.msra.mxu2 %v358_v32  ;;  %v299_v32 = vld [vmem:[%s1862_s2 + $0x308] sm:$0xff] }
  0x2d   : > { %v230_v34 = vld [vmem:[%s1862_s2 + $0xe0] sm:$0xff]  ;;  %526 = vmatpush.msra.mxu3 %v422_v33  ;;  %v423_v33 = vld [vmem:[%s1862_s2 + $0x6e8] sm:$0xff] }
  0x2e   : > { %v294_v35 = vld [vmem:[%s1862_s2 + $0x2e0] sm:$0xff]  ;;  %466 = vmatpush.msra.mxu0 %v230_v34  ;;  %v355_v34 = vld [vmem:[%s1862_s2 + $0x4c8] sm:$0xff] }
  0x2f   : > { %v354_v36 = vld [vmem:[%s1862_s2 + $0x4c0] sm:$0xff]  ;;  %486 = vmatpush.msra.mxu1 %v294_v35  ;;  %v231_v35 = vld [vmem:[%s1862_s2 + $0xe8] sm:$0xff] }
  0x30   : > { %v418_v37 = vld [vmem:[%s1862_s2 + $0x6c0] sm:$0xff]  ;;  %507 = vmatpush.msra.mxu2 %v354_v36  ;;  %v295_v36 = vld [vmem:[%s1862_s2 + $0x2e8] sm:$0xff] }
  0x31   : > { %v226_v38 = vld [vmem:[%s1862_s2 + $0xc0] sm:$0xff]  ;;  %527 = vmatpush.msra.mxu3 %v418_v37  ;;  %v419_v37 = vld [vmem:[%s1862_s2 + $0x6c8] sm:$0xff] }
  0x32   : > { %v290_v39 = vld [vmem:[%s1862_s2 + $0x2c0] sm:$0xff]  ;;  %467 = vmatpush.msra.mxu0 %v226_v38  ;;  %v351_v38 = vld [vmem:[%s1862_s2 + $0x4a8] sm:$0xff] }
  0x33   : > { %v350_v40 = vld [vmem:[%s1862_s2 + $0x4a0] sm:$0xff]  ;;  %487 = vmatpush.msra.mxu1 %v290_v39  ;;  %v227_v39 = vld [vmem:[%s1862_s2 + $0xc8] sm:$0xff] }
  0x34   : > { %v414_v41 = vld [vmem:[%s1862_s2 + $0x6a0] sm:$0xff]  ;;  %508 = vmatpush.msra.mxu2 %v350_v40  ;;  %v291_v40 = vld [vmem:[%s1862_s2 + $0x2c8] sm:$0xff] }
  0x35   : > { %v222_v42 = vld [vmem:[%s1862_s2 + $0xa0] sm:$0xff]  ;;  %528 = vmatpush.msra.mxu3 %v414_v41  ;;  %v415_v41 = vld [vmem:[%s1862_s2 + $0x6a8] sm:$0xff] }
  0x36   : > { %v286_v43 = vld [vmem:[%s1862_s2 + $0x2a0] sm:$0xff]  ;;  %468 = vmatpush.msra.mxu0 %v222_v42  ;;  %v347_v42 = vld [vmem:[%s1862_s2 + $0x488] sm:$0xff] }
  0x37   : > { %v346_v44 = vld [vmem:[%s1862_s2 + $0x480] sm:$0xff]  ;;  %488 = vmatpush.msra.mxu1 %v286_v43  ;;  %v223_v43 = vld [vmem:[%s1862_s2 + $0xa8] sm:$0xff] }
  0x38   : > { %v410_v45 = vld [vmem:[%s1862_s2 + $0x680] sm:$0xff]  ;;  %509 = vmatpush.msra.mxu2 %v346_v44  ;;  %v287_v44 = vld [vmem:[%s1862_s2 + $0x2a8] sm:$0xff] }
  0x39   : > { %v218_v46 = vld [vmem:[%s1862_s2 + $0x80] sm:$0xff]  ;;  %529 = vmatpush.msra.mxu3 %v410_v45  ;;  %v411_v45 = vld [vmem:[%s1862_s2 + $0x688] sm:$0xff] }
  0x3a   : > { %v282_v47 = vld [vmem:[%s1862_s2 + $0x280] sm:$0xff]  ;;  %469 = vmatpush.msra.mxu0 %v218_v46  ;;  %v343_v46 = vld [vmem:[%s1862_s2 + $0x468] sm:$0xff] }
  0x3b   : > { %v342_v48 = vld [vmem:[%s1862_s2 + $0x460] sm:$0xff]  ;;  %489 = vmatpush.msra.mxu1 %v282_v47  ;;  %v219_v47 = vld [vmem:[%s1862_s2 + $0x88] sm:$0xff] }
  0x3c   : > { %v406_v49 = vld [vmem:[%s1862_s2 + $0x660] sm:$0xff]  ;;  %510 = vmatpush.msra.mxu2 %v342_v48  ;;  %v283_v48 = vld [vmem:[%s1862_s2 + $0x288] sm:$0xff] }
  0x3d   : > { %v214_v50 = vld [vmem:[%s1862_s2 + $0x60] sm:$0xff]  ;;  %530 = vmatpush.msra.mxu3 %v406_v49  ;;  %v407_v49 = vld [vmem:[%s1862_s2 + $0x668] sm:$0xff] }
  0x3e   : > { %v278_v51 = vld [vmem:[%s1862_s2 + $0x260] sm:$0xff]  ;;  %470 = vmatpush.msra.mxu0 %v214_v50  ;;  %v339_v50 = vld [vmem:[%s1862_s2 + $0x448] sm:$0xff] }
  0x3f   : > { %v338_v52 = vld [vmem:[%s1862_s2 + $0x440] sm:$0xff]  ;;  %490 = vmatpush.msra.mxu1 %v278_v51  ;;  %v215_v51 = vld [vmem:[%s1862_s2 + $0x68] sm:$0xff] }
  0x40   : > { %v402_v53 = vld [vmem:[%s1862_s2 + $0x640] sm:$0xff]  ;;  %511 = vmatpush.msra.mxu2 %v338_v52  ;;  %v279_v52 = vld [vmem:[%s1862_s2 + $0x268] sm:$0xff] }
  0x41   : > { %v210_v54 = vld [vmem:[%s1862_s2 + $0x40] sm:$0xff]  ;;  %531 = vmatpush.msra.mxu3 %v402_v53  ;;  %v403_v53 = vld [vmem:[%s1862_s2 + $0x648] sm:$0xff] }
  0x42   : > { %v274_v55 = vld [vmem:[%s1862_s2 + $0x240] sm:$0xff]  ;;  %471 = vmatpush.msra.mxu0 %v210_v54  ;;  %v335_v54 = vld [vmem:[%s1862_s2 + $0x428] sm:$0xff] }
  0x43   : > { %v334_v56 = vld [vmem:[%s1862_s2 + $0x420] sm:$0xff]  ;;  %491 = vmatpush.msra.mxu1 %v274_v55  ;;  %v211_v55 = vld [vmem:[%s1862_s2 + $0x48] sm:$0xff] }
  0x44   : > { %v398_v57 = vld [vmem:[%s1862_s2 + $0x620] sm:$0xff]  ;;  %512 = vmatpush.msra.mxu2 %v334_v56  ;;  %v275_v56 = vld [vmem:[%s1862_s2 + $0x248] sm:$0xff] }
  0x45   : > { %v206_v58 = vld [vmem:[%s1862_s2 + $0x20] sm:$0xff]  ;;  %532 = vmatpush.msra.mxu3 %v398_v57  ;;  %v399_v57 = vld [vmem:[%s1862_s2 + $0x628] sm:$0xff] }
  0x46   : > { %v270_v59 = vld [vmem:[%s1862_s2 + $0x220] sm:$0xff]  ;;  %472 = vmatpush.msra.mxu0 %v206_v58  ;;  %v331_v58 = vld [vmem:[%s1862_s2 + $0x408] sm:$0xff] }
  0x47   : > { %v330_v60 = vld [vmem:[%s1862_s2 + $0x400] sm:$0xff]  ;;  %492 = vmatpush.msra.mxu1 %v270_v59  ;;  %v207_v59 = vld [vmem:[%s1862_s2 + $0x28] sm:$0xff] }
  0x48   : > { %v394_v61 = vld [vmem:[%s1862_s2 + $0x600] sm:$0xff]  ;;  %513 = vmatpush.msra.mxu2 %v330_v60  ;;  %v1413_v60 = vld [vmem:[%s1398_s21 + $0x10] sm:$0xff] }
  0x49   : > { %v202_v0 = vld [vmem:[%s1862_s2] sm:$0xff]  ;;  %533 = vmatpush.msra.mxu3 %v394_v61  ;;  %v271_v61 = vld [vmem:[%s1862_s2 + $0x228] sm:$0xff]  ;;  %514 = vmatmul.f32.vlgmr.msra.gmra.mxu2 %v1413_v60 }
  0x4a   : > { %v266_v1 = vld [vmem:[%s1862_s2 + $0x200] sm:$0xff]  ;;  %578 = vmatpush.msrb.mxu2 %v391_v62  ;;  %473 = vmatpush.msra.mxu0 %v202_v0  ;;  %v392_v62 = vld [vmem:[%s1862_s2 + $0x5f0] sm:$0xff]  ;;  %v1425_v0 = vld [vmem:[%s1398_s21 + $0x18] sm:$0xff] }
  0x4b   : > { %598 = vmatpush.msrb.mxu3 %v455_v63  ;;  %493 = vmatpush.msra.mxu1 %v266_v1  ;;  %v395_v63 = vld [vmem:[%s1862_s2 + $0x608] sm:$0xff] }
  0x4c   : > { %579 = vmatpush.msrb.mxu2 %v387_v2  ;;  %538 = vmatpush.msrb.mxu0 %v263_v3  ;;  %v203_v1 = vld [vmem:[%s1862_s2 + $0x8] sm:$0xff]  ;;  %v388_v2 = vld [vmem:[%s1862_s2 + $0x5d0] sm:$0xff] }
  0x4d   : > { %558 = vmatpush.msrb.mxu1 %v327_v4  ;;  %599 = vmatpush.msrb.mxu3 %v451_v5  ;;  %v456_v3 = vld [vmem:[%s1862_s2 + $0x7f0] sm:$0xff]  ;;  %v267_v4 = vld [vmem:[%s1862_s2 + $0x208] sm:$0xff]  ;;  %v1441_v5 = vld [vmem:[%s1398_s21] sm:$0xff] }
  0x4e   : > { %580 = vmatpush.msrb.mxu2 %v383_v6  ;;  %539 = vmatpush.msrb.mxu0 %v259_v7  ;;  %v1445_v6 = vld [vmem:[%s1398_s21 + $0x8] sm:$0xff]  ;;  %v264_v7 = vld [vmem:[%s1862_s2 + $0x1f0] sm:$0xff] }
  0x4f   : > { %559 = vmatpush.msrb.mxu1 %v323_v8  ;;  %600 = vmatpush.msrb.mxu3 %v447_v9  ;;  %v328_v8 = vld [vmem:[%s1862_s2 + $0x3f0] sm:$0xff] }
  0x50   : > { %581 = vmatpush.msrb.mxu2 %v379_v10  ;;  %540 = vmatpush.msrb.mxu0 %v255_v11  ;;  %v384_v9 = vld [vmem:[%s1862_s2 + $0x5b0] sm:$0xff] }
  0x51   : > { %560 = vmatpush.msrb.mxu1 %v319_v12  ;;  %601 = vmatpush.msrb.mxu3 %v443_v13  ;;  %v452_v10 = vld [vmem:[%s1862_s2 + $0x7d0] sm:$0xff] }
  0x52   : > { %582 = vmatpush.msrb.mxu2 %v375_v14  ;;  %541 = vmatpush.msrb.mxu0 %v251_v15  ;;  %v260_v11 = vld [vmem:[%s1862_s2 + $0x1d0] sm:$0xff] }
  0x53   : > { %561 = vmatpush.msrb.mxu1 %v315_v16  ;;  %602 = vmatpush.msrb.mxu3 %v439_v17  ;;  %v324_v12 = vld [vmem:[%s1862_s2 + $0x3d0] sm:$0xff] }
  0x54   : > { %583 = vmatpush.msrb.mxu2 %v371_v18  ;;  %542 = vmatpush.msrb.mxu0 %v247_v19  ;;  %v380_v13 = vld [vmem:[%s1862_s2 + $0x590] sm:$0xff] }
  0x55   : > { %562 = vmatpush.msrb.mxu1 %v311_v20  ;;  %603 = vmatpush.msrb.mxu3 %v435_v21  ;;  %v448_v14 = vld [vmem:[%s1862_s2 + $0x7b0] sm:$0xff] }
  0x56   : > { %584 = vmatpush.msrb.mxu2 %v367_v22  ;;  %543 = vmatpush.msrb.mxu0 %v243_v23  ;;  %v256_v15 = vld [vmem:[%s1862_s2 + $0x1b0] sm:$0xff] }
  0x57   : > { %563 = vmatpush.msrb.mxu1 %v307_v24  ;;  %604 = vmatpush.msrb.mxu3 %v431_v25  ;;  %v320_v16 = vld [vmem:[%s1862_s2 + $0x3b0] sm:$0xff] }
  0x58   : > { %585 = vmatpush.msrb.mxu2 %v363_v26  ;;  %544 = vmatpush.msrb.mxu0 %v239_v27  ;;  %v376_v17 = vld [vmem:[%s1862_s2 + $0x570] sm:$0xff] }
  0x59   : > { %564 = vmatpush.msrb.mxu1 %v303_v28  ;;  %605 = vmatpush.msrb.mxu3 %v427_v29  ;;  %v444_v18 = vld [vmem:[%s1862_s2 + $0x790] sm:$0xff] }
  0x5a   : > { %586 = vmatpush.msrb.mxu2 %v359_v30  ;;  %545 = vmatpush.msrb.mxu0 %v235_v31  ;;  %v252_v19 = vld [vmem:[%s1862_s2 + $0x190] sm:$0xff] }
  0x5b   : > { %565 = vmatpush.msrb.mxu1 %v299_v32  ;;  %606 = vmatpush.msrb.mxu3 %v423_v33  ;;  %v316_v20 = vld [vmem:[%s1862_s2 + $0x390] sm:$0xff] }
  0x5c   : > { %587 = vmatpush.msrb.mxu2 %v355_v34  ;;  %546 = vmatpush.msrb.mxu0 %v231_v35  ;;  %v372_v21 = vld [vmem:[%s1862_s2 + $0x550] sm:$0xff] }
  0x5d   : > { %566 = vmatpush.msrb.mxu1 %v295_v36  ;;  %607 = vmatpush.msrb.mxu3 %v419_v37  ;;  %v440_v22 = vld [vmem:[%s1862_s2 + $0x770] sm:$0xff] }
  0x5e   : > { %588 = vmatpush.msrb.mxu2 %v351_v38  ;;  %547 = vmatpush.msrb.mxu0 %v227_v39  ;;  %v248_v23 = vld [vmem:[%s1862_s2 + $0x170] sm:$0xff] }
  0x5f   : > { %567 = vmatpush.msrb.mxu1 %v291_v40  ;;  %608 = vmatpush.msrb.mxu3 %v415_v41  ;;  %v312_v24 = vld [vmem:[%s1862_s2 + $0x370] sm:$0xff] }
  0x60   : > { %589 = vmatpush.msrb.mxu2 %v347_v42  ;;  %548 = vmatpush.msrb.mxu0 %v223_v43  ;;  %v368_v25 = vld [vmem:[%s1862_s2 + $0x530] sm:$0xff] }
  0x61   : > { %568 = vmatpush.msrb.mxu1 %v287_v44  ;;  %609 = vmatpush.msrb.mxu3 %v411_v45  ;;  %v436_v26 = vld [vmem:[%s1862_s2 + $0x750] sm:$0xff] }
  0x62   : > { %590 = vmatpush.msrb.mxu2 %v343_v46  ;;  %549 = vmatpush.msrb.mxu0 %v219_v47  ;;  %v244_v27 = vld [vmem:[%s1862_s2 + $0x150] sm:$0xff] }
  0x63   : > { %569 = vmatpush.msrb.mxu1 %v283_v48  ;;  %610 = vmatpush.msrb.mxu3 %v407_v49  ;;  %v308_v28 = vld [vmem:[%s1862_s2 + $0x350] sm:$0xff] }
  0x64   : > { %591 = vmatpush.msrb.mxu2 %v339_v50  ;;  %550 = vmatpush.msrb.mxu0 %v215_v51  ;;  %v364_v29 = vld [vmem:[%s1862_s2 + $0x510] sm:$0xff] }
  0x65   : > { %570 = vmatpush.msrb.mxu1 %v279_v52  ;;  %611 = vmatpush.msrb.mxu3 %v403_v53  ;;  %v432_v30 = vld [vmem:[%s1862_s2 + $0x730] sm:$0xff] }
  0x66   : > { %592 = vmatpush.msrb.mxu2 %v335_v54  ;;  %551 = vmatpush.msrb.mxu0 %v211_v55  ;;  %v240_v31 = vld [vmem:[%s1862_s2 + $0x130] sm:$0xff] }
  0x67   : > { %571 = vmatpush.msrb.mxu1 %v275_v56  ;;  %612 = vmatpush.msrb.mxu3 %v399_v57  ;;  %v304_v32 = vld [vmem:[%s1862_s2 + $0x330] sm:$0xff] }
  0x68   : > { %593 = vmatpush.msrb.mxu2 %v331_v58  ;;  %552 = vmatpush.msrb.mxu0 %v207_v59  ;;  %v360_v33 = vld [vmem:[%s1862_s2 + $0x4f0] sm:$0xff] }
  0x69   : > { %572 = vmatpush.msrb.mxu1 %v271_v61  ;;  %613 = vmatpush.msrb.mxu3 %v395_v63  ;;  %v428_v34 = vld [vmem:[%s1862_s2 + $0x710] sm:$0xff] }
  0x6a   : > { %658 = vmatpush.msra.mxu2 %v392_v62  ;;  %534 = vmatmul.f32.vlgmr.msra.gmra.mxu3 %v1425_v0  ;;  %v236_v35 = vld [vmem:[%s1862_s2 + $0x110] sm:$0xff] }
  0x6b   : > { %553 = vmatpush.msrb.mxu0 %v203_v1  ;;  %678 = vmatpush.msra.mxu3 %v456_v3  ;;  %v300_v36 = vld [vmem:[%s1862_s2 + $0x310] sm:$0xff]  ;;  %v393_v1 = vld [vmem:[%s1862_s2 + $0x5f8] sm:$0xff] }
  0x6c   : > { %659 = vmatpush.msra.mxu2 %v388_v2  ;;  %573 = vmatpush.msrb.mxu1 %v267_v4  ;;  %v356_v37 = vld [vmem:[%s1862_s2 + $0x4d0] sm:$0xff] }
  0x6d   : > { %474 = vmatmul.f32.vlgmr.msra.gmra.mxu0 %v1441_v5  ;;  %494 = vmatmul.f32.vlgmr.msra.gmra.mxu1 %v1445_v6  ;;  %v424_v38 = vld [vmem:[%s1862_s2 + $0x6f0] sm:$0xff] }
  0x6e   : > { %618 = vmatpush.msra.mxu0 %v264_v7  ;;  %638 = vmatpush.msra.mxu1 %v328_v8  ;;  %v232_v39 = vld [vmem:[%s1862_s2 + $0xf0] sm:$0xff]  ;;  %v389_v7 = vld [vmem:[%s1862_s2 + $0x5d8] sm:$0xff] }
  0x6f   : > { %660 = vmatpush.msra.mxu2 %v384_v9  ;;  %679 = vmatpush.msra.mxu3 %v452_v10  ;;  %v296_v40 = vld [vmem:[%s1862_s2 + $0x2f0] sm:$0xff]  ;;  %v457_v8 = vld [vmem:[%s1862_s2 + $0x7f8] sm:$0xff] }
  0x70   : > { %619 = vmatpush.msra.mxu0 %v260_v11  ;;  %639 = vmatpush.msra.mxu1 %v324_v12  ;;  %v352_v41 = vld [vmem:[%s1862_s2 + $0x4b0] sm:$0xff]  ;;  %v265_v11 = vld [vmem:[%s1862_s2 + $0x1f8] sm:$0xff] }
  0x71   : > { %661 = vmatpush.msra.mxu2 %v380_v13  ;;  %680 = vmatpush.msra.mxu3 %v448_v14  ;;  %v420_v42 = vld [vmem:[%s1862_s2 + $0x6d0] sm:$0xff]  ;;  %v329_v12 = vld [vmem:[%s1862_s2 + $0x3f8] sm:$0xff] }
  0x72   : > { %620 = vmatpush.msra.mxu0 %v256_v15  ;;  %640 = vmatpush.msra.mxu1 %v320_v16  ;;  %v228_v43 = vld [vmem:[%s1862_s2 + $0xd0] sm:$0xff]  ;;  %v385_v13 = vld [vmem:[%s1862_s2 + $0x5b8] sm:$0xff] }
  0x73   : > { %662 = vmatpush.msra.mxu2 %v376_v17  ;;  %681 = vmatpush.msra.mxu3 %v444_v18  ;;  %v292_v44 = vld [vmem:[%s1862_s2 + $0x2d0] sm:$0xff]  ;;  %v453_v14 = vld [vmem:[%s1862_s2 + $0x7d8] sm:$0xff] }
  0x74   : > { %621 = vmatpush.msra.mxu0 %v252_v19  ;;  %641 = vmatpush.msra.mxu1 %v316_v20  ;;  %v348_v45 = vld [vmem:[%s1862_s2 + $0x490] sm:$0xff]  ;;  %v261_v15 = vld [vmem:[%s1862_s2 + $0x1d8] sm:$0xff] }
  0x75   : > { %663 = vmatpush.msra.mxu2 %v372_v21  ;;  %682 = vmatpush.msra.mxu3 %v440_v22  ;;  %v416_v46 = vld [vmem:[%s1862_s2 + $0x6b0] sm:$0xff]  ;;  %v325_v16 = vld [vmem:[%s1862_s2 + $0x3d8] sm:$0xff] }
  0x76   : > { %622 = vmatpush.msra.mxu0 %v248_v23  ;;  %642 = vmatpush.msra.mxu1 %v312_v24  ;;  %v224_v47 = vld [vmem:[%s1862_s2 + $0xb0] sm:$0xff]  ;;  %v381_v17 = vld [vmem:[%s1862_s2 + $0x598] sm:$0xff] }
  0x77   : > { %664 = vmatpush.msra.mxu2 %v368_v25  ;;  %683 = vmatpush.msra.mxu3 %v436_v26  ;;  %v288_v48 = vld [vmem:[%s1862_s2 + $0x2b0] sm:$0xff]  ;;  %v449_v18 = vld [vmem:[%s1862_s2 + $0x7b8] sm:$0xff] }
  0x78   : > { %623 = vmatpush.msra.mxu0 %v244_v27  ;;  %643 = vmatpush.msra.mxu1 %v308_v28  ;;  %v344_v49 = vld [vmem:[%s1862_s2 + $0x470] sm:$0xff]  ;;  %v257_v19 = vld [vmem:[%s1862_s2 + $0x1b8] sm:$0xff] }
  0x79   : > { %665 = vmatpush.msra.mxu2 %v364_v29  ;;  %684 = vmatpush.msra.mxu3 %v432_v30  ;;  %v412_v50 = vld [vmem:[%s1862_s2 + $0x690] sm:$0xff]  ;;  %v321_v20 = vld [vmem:[%s1862_s2 + $0x3b8] sm:$0xff] }
  0x7a   : > { %624 = vmatpush.msra.mxu0 %v240_v31  ;;  %644 = vmatpush.msra.mxu1 %v304_v32  ;;  %v220_v51 = vld [vmem:[%s1862_s2 + $0x90] sm:$0xff]  ;;  %v377_v21 = vld [vmem:[%s1862_s2 + $0x578] sm:$0xff] }
  0x7b   : > { %666 = vmatpush.msra.mxu2 %v360_v33  ;;  %685 = vmatpush.msra.mxu3 %v428_v34  ;;  %v284_v52 = vld [vmem:[%s1862_s2 + $0x290] sm:$0xff]  ;;  %v445_v22 = vld [vmem:[%s1862_s2 + $0x798] sm:$0xff] }
  0x7c   : > { %625 = vmatpush.msra.mxu0 %v236_v35  ;;  %645 = vmatpush.msra.mxu1 %v300_v36  ;;  %v340_v53 = vld [vmem:[%s1862_s2 + $0x450] sm:$0xff]  ;;  %v253_v23 = vld [vmem:[%s1862_s2 + $0x198] sm:$0xff] }
  0x7d   : > { %667 = vmatpush.msra.mxu2 %v356_v37  ;;  %686 = vmatpush.msra.mxu3 %v424_v38  ;;  %v408_v54 = vld [vmem:[%s1862_s2 + $0x670] sm:$0xff]  ;;  %v317_v24 = vld [vmem:[%s1862_s2 + $0x398] sm:$0xff] }
  0x7e   : > { %626 = vmatpush.msra.mxu0 %v232_v39  ;;  %646 = vmatpush.msra.mxu1 %v296_v40  ;;  %v216_v55 = vld [vmem:[%s1862_s2 + $0x70] sm:$0xff]  ;;  %v373_v25 = vld [vmem:[%s1862_s2 + $0x558] sm:$0xff] }
  0x7f   : > { %668 = vmatpush.msra.mxu2 %v352_v41  ;;  %687 = vmatpush.msra.mxu3 %v420_v42  ;;  %v280_v56 = vld [vmem:[%s1862_s2 + $0x270] sm:$0xff]  ;;  %v441_v26 = vld [vmem:[%s1862_s2 + $0x778] sm:$0xff] }
  0x80   : > { %627 = vmatpush.msra.mxu0 %v228_v43  ;;  %647 = vmatpush.msra.mxu1 %v292_v44  ;;  %v336_v57 = vld [vmem:[%s1862_s2 + $0x430] sm:$0xff]  ;;  %v249_v27 = vld [vmem:[%s1862_s2 + $0x178] sm:$0xff] }
  0x81   : > { %669 = vmatpush.msra.mxu2 %v348_v45  ;;  %688 = vmatpush.msra.mxu3 %v416_v46  ;;  %v404_v58 = vld [vmem:[%s1862_s2 + $0x650] sm:$0xff]  ;;  %v313_v28 = vld [vmem:[%s1862_s2 + $0x378] sm:$0xff] }
  0x82   : > { %628 = vmatpush.msra.mxu0 %v224_v47  ;;  %648 = vmatpush.msra.mxu1 %v288_v48  ;;  %v212_v59 = vld [vmem:[%s1862_s2 + $0x50] sm:$0xff]  ;;  %v369_v29 = vld [vmem:[%s1862_s2 + $0x538] sm:$0xff] }
  0x83   : > { %670 = vmatpush.msra.mxu2 %v344_v49  ;;  %689 = vmatpush.msra.mxu3 %v412_v50  ;;  %v276_v61 = vld [vmem:[%s1862_s2 + $0x250] sm:$0xff]  ;;  %v437_v30 = vld [vmem:[%s1862_s2 + $0x758] sm:$0xff] }
  0x84   : > { %629 = vmatpush.msra.mxu0 %v220_v51  ;;  %649 = vmatpush.msra.mxu1 %v284_v52  ;;  %v332_v62 = vld [vmem:[%s1862_s2 + $0x410] sm:$0xff]  ;;  %v245_v31 = vld [vmem:[%s1862_s2 + $0x158] sm:$0xff] }
  0x85   : > { %671 = vmatpush.msra.mxu2 %v340_v53  ;;  %690 = vmatpush.msra.mxu3 %v408_v54  ;;  %v400_v63 = vld [vmem:[%s1862_s2 + $0x630] sm:$0xff]  ;;  %v309_v32 = vld [vmem:[%s1862_s2 + $0x358] sm:$0xff] }
  0x86   : > { %630 = vmatpush.msra.mxu0 %v216_v55  ;;  %650 = vmatpush.msra.mxu1 %v280_v56  ;;  %v208_v2 = vld [vmem:[%s1862_s2 + $0x30] sm:$0xff]  ;;  %v365_v33 = vld [vmem:[%s1862_s2 + $0x518] sm:$0xff] }
  0x87   : > { %672 = vmatpush.msra.mxu2 %v336_v57  ;;  %691 = vmatpush.msra.mxu3 %v404_v58  ;;  %v272_v3 = vld [vmem:[%s1862_s2 + $0x230] sm:$0xff]  ;;  %v433_v34 = vld [vmem:[%s1862_s2 + $0x738] sm:$0xff] }
  0x88   : > { %631 = vmatpush.msra.mxu0 %v212_v59  ;;  %651 = vmatpush.msra.mxu1 %v276_v61  ;;  %v396_v4 = vld [vmem:[%s1862_s2 + $0x610] sm:$0xff]  ;;  %v241_v35 = vld [vmem:[%s1862_s2 + $0x138] sm:$0xff] }
  0x89   : > { %673 = vmatpush.msra.mxu2 %v332_v62  ;;  %692 = vmatpush.msra.mxu3 %v400_v63  ;;  %v204_v9 = vld [vmem:[%s1862_s2 + $0x10] sm:$0xff]  ;;  %v305_v36 = vld [vmem:[%s1862_s2 + $0x338] sm:$0xff] }
  0x8a   : > { %594 = vmatmul.f32.vlgmr.msrb.gmra.mxu2 %v1413_v60  ;;  %632 = vmatpush.msra.mxu0 %v208_v2  ;;  %v268_v10 = vld [vmem:[%s1862_s2 + $0x210] sm:$0xff]  ;;  %v361_v37 = vld [vmem:[%s1862_s2 + $0x4f8] sm:$0xff] }
  0x8b   : > { %738 = vmatpush.msrb.mxu2 %v393_v1  ;;  %652 = vmatpush.msra.mxu1 %v272_v3  ;;  %v429_v38 = vld [vmem:[%s1862_s2 + $0x718] sm:$0xff] }
  0x8c   : > { %693 = vmatpush.msra.mxu3 %v396_v4  ;;  %633 = vmatpush.msra.mxu0 %v204_v9  ;;  %v237_v39 = vld [vmem:[%s1862_s2 + $0x118] sm:$0xff] }
  0x8d   : > { %614 = vmatmul.f32.vlgmr.msrb.gmra.mxu3 %v1425_v0  ;;  %739 = vmatpush.msrb.mxu2 %v389_v7  ;;  %v301_v40 = vld [vmem:[%s1862_s2 + $0x318] sm:$0xff] }
  0x8e   : > { %758 = vmatpush.msrb.mxu3 %v457_v8  ;;  %653 = vmatpush.msra.mxu1 %v268_v10  ;;  %v357_v41 = vld [vmem:[%s1862_s2 + $0x4d8] sm:$0xff] }
  0x8f   : > { %554 = vmatmul.f32.vlgmr.msrb.gmra.mxu0 %v1441_v5  ;;  %574 = vmatmul.f32.vlgmr.msrb.gmra.mxu1 %v1445_v6  ;;  %v425_v42 = vld [vmem:[%s1862_s2 + $0x6f8] sm:$0xff] }
  0x90   : > { %698 = vmatpush.msrb.mxu0 %v265_v11  ;;  %718 = vmatpush.msrb.mxu1 %v329_v12  ;;  %v233_v43 = vld [vmem:[%s1862_s2 + $0xf8] sm:$0xff] }
  0x91   : > { %740 = vmatpush.msrb.mxu2 %v385_v13  ;;  %759 = vmatpush.msrb.mxu3 %v453_v14  ;;  %v297_v44 = vld [vmem:[%s1862_s2 + $0x2f8] sm:$0xff] }
  0x92   : > { %699 = vmatpush.msrb.mxu0 %v261_v15  ;;  %719 = vmatpush.msrb.mxu1 %v325_v16  ;;  %v353_v45 = vld [vmem:[%s1862_s2 + $0x4b8] sm:$0xff] }
  0x93   : > { %741 = vmatpush.msrb.mxu2 %v381_v17  ;;  %760 = vmatpush.msrb.mxu3 %v449_v18  ;;  %v421_v46 = vld [vmem:[%s1862_s2 + $0x6d8] sm:$0xff] }
  0x94   : > { %700 = vmatpush.msrb.mxu0 %v257_v19  ;;  %720 = vmatpush.msrb.mxu1 %v321_v20  ;;  %v229_v47 = vld [vmem:[%s1862_s2 + $0xd8] sm:$0xff] }
  0x95   : > { %742 = vmatpush.msrb.mxu2 %v377_v21  ;;  %761 = vmatpush.msrb.mxu3 %v445_v22  ;;  %v293_v48 = vld [vmem:[%s1862_s2 + $0x2d8] sm:$0xff] }
  0x96   : > { %701 = vmatpush.msrb.mxu0 %v253_v23  ;;  %721 = vmatpush.msrb.mxu1 %v317_v24  ;;  %v349_v49 = vld [vmem:[%s1862_s2 + $0x498] sm:$0xff] }
  0x97   : > { %743 = vmatpush.msrb.mxu2 %v373_v25  ;;  %762 = vmatpush.msrb.mxu3 %v441_v26  ;;  %v417_v50 = vld [vmem:[%s1862_s2 + $0x6b8] sm:$0xff] }
  0x98   : > { %702 = vmatpush.msrb.mxu0 %v249_v27  ;;  %722 = vmatpush.msrb.mxu1 %v313_v28  ;;  %v225_v51 = vld [vmem:[%s1862_s2 + $0xb8] sm:$0xff] }
  0x99   : > { %744 = vmatpush.msrb.mxu2 %v369_v29  ;;  %763 = vmatpush.msrb.mxu3 %v437_v30  ;;  %v289_v52 = vld [vmem:[%s1862_s2 + $0x2b8] sm:$0xff] }
  0x9a   : > { %703 = vmatpush.msrb.mxu0 %v245_v31  ;;  %723 = vmatpush.msrb.mxu1 %v309_v32  ;;  %v345_v53 = vld [vmem:[%s1862_s2 + $0x478] sm:$0xff] }
  0x9b   : > { %745 = vmatpush.msrb.mxu2 %v365_v33  ;;  %764 = vmatpush.msrb.mxu3 %v433_v34  ;;  %v413_v54 = vld [vmem:[%s1862_s2 + $0x698] sm:$0xff] }
  0x9c   : > { %704 = vmatpush.msrb.mxu0 %v241_v35  ;;  %724 = vmatpush.msrb.mxu1 %v305_v36  ;;  %v221_v55 = vld [vmem:[%s1862_s2 + $0x98] sm:$0xff] }
  0x9d   : > { %746 = vmatpush.msrb.mxu2 %v361_v37  ;;  %765 = vmatpush.msrb.mxu3 %v429_v38  ;;  %v285_v56 = vld [vmem:[%s1862_s2 + $0x298] sm:$0xff]  ;;  %v780_v38 = vld [vmem:[%s1863_s3] sm:$0xf] }
  0x9e   : > { %705 = vmatpush.msrb.mxu0 %v237_v39  ;;  %725 = vmatpush.msrb.mxu1 %v301_v40  ;;  %v341_v57 = vld [vmem:[%s1862_s2 + $0x458] sm:$0xff]  ;;  %v782_v39 = vperm.slane %v780_v38, 0  ;;  %v783_v40 = vperm.slane %v780_v38, 1 }
  0x9f   : > { %747 = vmatpush.msrb.mxu2 %v357_v41  ;;  %766 = vmatpush.msrb.mxu3 %v425_v42  ;;  %v409_v58 = vld [vmem:[%s1862_s2 + $0x678] sm:$0xff] }
  0xa0   : > { %706 = vmatpush.msrb.mxu0 %v233_v43  ;;  %726 = vmatpush.msrb.mxu1 %v297_v44  ;;  %v217_v59 = vld [vmem:[%s1862_s2 + $0x78] sm:$0xff] }
  0xa1   : > { %748 = vmatpush.msrb.mxu2 %v353_v45  ;;  %767 = vmatpush.msrb.mxu3 %v421_v46  ;;  %v281_v61 = vld [vmem:[%s1862_s2 + $0x278] sm:$0xff] }
  0xa2   : > { %707 = vmatpush.msrb.mxu0 %v229_v47  ;;  %727 = vmatpush.msrb.mxu1 %v293_v48  ;;  %v337_v62 = vld [vmem:[%s1862_s2 + $0x438] sm:$0xff] }
  0xa3   : > { %749 = vmatpush.msrb.mxu2 %v349_v49  ;;  %768 = vmatpush.msrb.mxu3 %v417_v50  ;;  %v405_v63 = vld [vmem:[%s1862_s2 + $0x658] sm:$0xff]  ;;  %v784_v49 = vperm.slane %v780_v38, 2 }
  0xa4   : > { %674 = vmatmul.f32.vlgmr.msra.gmra.mxu2 %v1413_v60  ;;  %708 = vmatpush.msrb.mxu0 %v225_v51  ;;  %v213_v1 = vld [vmem:[%s1862_s2 + $0x58] sm:$0xff] }
  0xa5   : > { %728 = vmatpush.msrb.mxu1 %v289_v52  ;;  %750 = vmatpush.msrb.mxu2 %v345_v53  ;;  %v277_v2 = vld [vmem:[%s1862_s2 + $0x258] sm:$0xff]  ;;  %v785_v52 = vperm.slane %v780_v38, 3 }
  0xa6   : > { %769 = vmatpush.msrb.mxu3 %v413_v54  ;;  %709 = vmatpush.msrb.mxu0 %v221_v55  ;;  %v333_v3 = vld [vmem:[%s1862_s2 + $0x418] sm:$0xff] }
  0xa7   : > { %694 = vmatmul.f32.vlgmr.msra.gmra.mxu3 %v1425_v0  ;;  %729 = vmatpush.msrb.mxu1 %v285_v56  ;;  %v401_v4 = vld [vmem:[%s1862_s2 + $0x638] sm:$0xff] }
  0xa8   : > { %751 = vmatpush.msrb.mxu2 %v341_v57  ;;  %770 = vmatpush.msrb.mxu3 %v409_v58  ;;  %v209_v7 = vld [vmem:[%s1862_s2 + $0x38] sm:$0xff] }
  0xa9   : > { %634 = vmatmul.f32.vlgmr.msra.gmra.mxu0 %v1441_v5  ;;  %654 = vmatmul.f32.vlgmr.msra.gmra.mxu1 %v1445_v6  ;;  %v273_v8 = vld [vmem:[%s1862_s2 + $0x238] sm:$0xff] }
  0xaa   : > { %710 = vmatpush.msrb.mxu0 %v217_v59  ;;  %730 = vmatpush.msrb.mxu1 %v281_v61  ;;  %v397_v9 = vld [vmem:[%s1862_s2 + $0x618] sm:$0xff] }
  0xab   : > { %752 = vmatpush.msrb.mxu2 %v337_v62  ;;  %771 = vmatpush.msrb.mxu3 %v405_v63  ;;  %v205_v10 = vld [vmem:[%s1862_s2 + $0x18] sm:$0xff] }
  0xac   : > { %711 = vmatpush.msrb.mxu0 %v213_v1  ;;  %731 = vmatpush.msrb.mxu1 %v277_v2  ;;  %v269_v11 = vld [vmem:[%s1862_s2 + $0x218] sm:$0xff] }
  0xad   : > { %753 = vmatpush.msrb.mxu2 %v333_v3  ;;  %772 = vmatpush.msrb.mxu3 %v401_v4 }
  0xae   : > { %754 = vmatmul.f32.vlgmr.msrb.gmra.mxu2 %v1413_v60  ;;  %712 = vmatpush.msrb.mxu0 %v209_v7 }
  0xaf   : > { %732 = vmatpush.msrb.mxu1 %v273_v8  ;;  %773 = vmatpush.msrb.mxu3 %v397_v9 }
  0xb0   : > { %774 = vmatmul.f32.vlgmr.msrb.gmra.mxu3 %v1425_v0  ;;  %713 = vmatpush.msrb.mxu0 %v205_v10 }
  0xb1   : > { %733 = vmatpush.msrb.mxu1 %v269_v11  ;;  %714 = vmatmul.f32.vlgmr.msrb.gmra.mxu0 %v1441_v5  ;;  %v778_v5 = vld [vmem:[%s1861_s1] sm:$0xff] }
  0xb2   : > { %734 = vmatmul.f32.vlgmr.msrb.gmra.mxu1 %v1445_v6  ;;  %v779_v6 = vld [vmem:[%s1861_s1 + $0x8] sm:$0xff] }
  0xcc   : > { %v515_v14 = vpop.f32.mrf.mxu2 }
  0xea   : > { %v475_v60 = vpop.f32.mrf.mxu0  ;;  %v495_v12 = vpop.f32.mrf.mxu1 }
  0xeb   : > { %v496_v13 = vadd.f32 %v495_v12, %v475_v60 }
  0xed   : > { %v516_v15 = vadd.f32 %v515_v14, %v496_v13  ;;  %v535_v16 = vpop.f32.mrf.mxu3 }
  0xef   : > { %v536_v17 = vadd.f32 %v535_v16, %v516_v15 }
  0xf1   : > { %812 = vmatpush.msra.mxu0 %v536_v17 }
  0xf2   : > { %961 = vmatmul.msk.f32.vlgmr.msra.gmra.mxu0 %vm790_vm0, %v778_v5 }
  0xfa   : > { %962 = vmatmul.msk.f32.gmra.mxu0 %vm790_vm0, %v779_v6 }
 0x10c   : > { %v555_v18 = vpop.f32.mrf.mxu0  ;;  %v575_v19 = vpop.f32.mrf.mxu1 }
 0x10d   : > { %v595_v20 = vpop.f32.mrf.mxu2  ;;  %v576_v21 = vadd.f32 %v575_v19, %v555_v18 }
 0x10f   : > { %v596_v22 = vadd.f32 %v595_v20, %v576_v21 }
 0x110   : > { %v615_v0 = vpop.f32.mrf.mxu3 }
 0x111   : > { %v616_v23 = vadd.f32 %v615_v0, %v596_v22 }
 0x113   : > { %835 = vmatpush.msra.mxu1 %v616_v23 }
 0x114   : > { %963 = vmatmul.msk.f32.vlgmr.msra.gmra.mxu1 %vm790_vm0, %v778_v5 }
 0x11c   : > { %964 = vmatmul.msk.f32.gmra.mxu1 %vm790_vm0, %v779_v6 }
 0x126   : > { %v635_v24 = vpop.f32.mrf.mxu0  ;;  %v655_v25 = vpop.f32.mrf.mxu1 }
 0x127   : > { %v675_v26 = vpop.f32.mrf.mxu2  ;;  %v656_v27 = vadd.f32 %v655_v25, %v635_v24 }
 0x129   : > { %v676_v28 = vadd.f32 %v675_v26, %v656_v27 }
 0x12a   : > { %v695_v29 = vpop.f32.mrf.mxu3 }
 0x12b   : > { %v696_v30 = vadd.f32 %v695_v29, %v676_v28 }
 0x12d   : > { %858 = vmatpush.msra.mxu2 %v696_v30 }
 0x12e   : > { %v715_v31 = vpop.f32.mrf.mxu0  ;;  %965 = vmatmul.msk.f32.vlgmr.msra.gmra.mxu2 %vm790_vm0, %v778_v5 }
 0x12f   : > { %v735_v32 = vpop.f32.mrf.mxu1 }
 0x130   : > { %v736_v33 = vadd.f32 %v735_v32, %v715_v31 }
 0x131   : > { %v755_v34 = vpop.f32.mrf.mxu2 }
 0x132   : > { %v756_v35 = vadd.f32 %v755_v34, %v736_v33 }
 0x133   : > { %v775_v36 = vpop.f32.mrf.mxu3 }
 0x134   : > { %v776_v37 = vadd.f32 %v775_v36, %v756_v35 }
 0x136   : > { %881 = vmatpush.msra.mxu3 %v776_v37  ;;  %966 = vmatmul.msk.f32.gmra.mxu2 %vm790_vm0, %v779_v6 }
 0x137   : > { %967 = vmatmul.msk.f32.vlgmr.msra.gmra.mxu3 %vm790_vm0, %v778_v5 }
 0x13f   : > { %968 = vmatmul.msk.f32.gmra.mxu3 %vm790_vm0, %v779_v6 }
 0x16f   : > { %v814_v41 = vpop.f32.mrf.mxu0 }
 0x170   : > { %v815_v43 = vadd.f32 %v814_v41, %v782_v39 }
 0x172   : > { %889 = vst [vmem:[%s197_s13] sm:$0xff] %v815_v43 }
 0x177   : > { %v817_v45 = vpop.f32.mrf.mxu0 }
 0x178   : > { %v818_v47 = vadd.f32 %v817_v45, %v782_v39 }
 0x17a   : > { %893 = vst [vmem:[%s197_s13 + $0x20] sm:$0xff] %v818_v47 }
 0x191   : > { %v837_v42 = vpop.f32.mrf.mxu1 }
 0x192   : > { %v838_v44 = vadd.f32 %v837_v42, %v783_v40 }
 0x194   : > { %890 = vst [vmem:[%s197_s13 + $0x8] sm:$0xff] %v838_v44 }
 0x199   : > { %v840_v46 = vpop.f32.mrf.mxu1 }
 0x19a   : > { %v841_v48 = vadd.f32 %v840_v46, %v783_v40 }
 0x19c   : > { %894 = vst [vmem:[%s197_s13 + $0x28] sm:$0xff] %v841_v48 }
 0x1b1   : > { %v860_v50 = vpop.f32.mrf.mxu2 }
 0x1b2   : > { %v861_v51 = vadd.f32 %v860_v50, %v784_v49 }
 0x1b4   : > { %891 = vst [vmem:[%s197_s13 + $0x10] sm:$0xff] %v861_v51 }
 0x1b9   : > { %v863_v53 = vpop.f32.mrf.mxu2 }
 0x1ba   : > { %v883_v54 = vpop.f32.mrf.mxu3  ;;  %v864_v55 = vadd.f32 %v863_v53, %v784_v49 }
 0x1bb   : > { %v884_v56 = vadd.f32 %v883_v54, %v785_v52 }
 0x1bc   : > { %895 = vst [vmem:[%s197_s13 + $0x30] sm:$0xff] %v864_v55 }
 0x1bd   : > { %892 = vst [vmem:[%s197_s13 + $0x18] sm:$0xff] %v884_v56 }
 0x1c2   : > { %v886_v57 = vpop.f32.mrf.mxu3 }
 0x1c3   : > { %v887_v58 = vadd.f32 %v886_v57, %v785_v52 }
 0x1c5   : > { %896 = vst [vmem:[%s197_s13 + $0x38] sm:$0xff] %v887_v58 }
 0x1c6 PF: > { %s14_s15 = sadd.s32 1, %s987_s15  }
 0x1c7   : > { %p11_p4 = scmp.ge.s32.totalorder %s14_s15, 4  }
 0x1c9   :  { %13 = sbr.rel (!%p11_p4) target bundleno = 1 (0x1), region = 66 }

</bundles_post_ra>
